<compile_context>
chip_gen: v7x
topology: tpu7x:2x2x1
jax: 0.10.0
libtpu: 0.0.40
codegen_flags: <defaults>
</compile_context>

<pallas_src>
from typing import Any, Callable

import jax
import jax.numpy as jnp
from jax.experimental import pallas as pl
from jax.experimental.pallas import tpu as pltpu


_LANES = 128
_TARGET_BLOCK_BYTES = 4 << 20      # past the HBM-roofline knee on all gens
_VMEM_BUDGET_BYTES = 44 << 20      # conservative vs v7x's 64 MiB per-TC VMEM


# ----------------------------------------------------------------------------
# Kernels
# ----------------------------------------------------------------------------
def _softmax_kernel(x_ref, o_ref):
    """Row softmax, rows on sublanes, full row on lanes (C >= 128 path)."""
    x = x_ref[...].astype(jnp.float32)               # single upcast (v5e-friendly)
    m = jnp.max(x, axis=-1, keepdims=True)           # XLU reduce
    e = jnp.exp(x - m)                                # EUP
    s = jnp.sum(e, axis=-1, keepdims=True)            # f32 accumulation
    o_ref[...] = (e / s).astype(o_ref.dtype)           # exact normalize


def _softmax_packed_kernel(bd_ref, x_ref, o_ref):
    """Segmented softmax: each 128-lane row packs 128/C independent rows.

    Stability shift uses the packed-row global max (constant within every
    segment, so the softmax value is mathematically unchanged); segment sums
    are broadcast across their lanes by a matmul with a static block-diagonal
    ones matrix on the otherwise-idle MXU.
    """
    x = x_ref[...].astype(jnp.float32)               # (TR, 128)
    m = jnp.max(x, axis=-1, keepdims=True)           # packed-row max (overflow-safe)
    e = jnp.exp(x - m)
    # (TR,128) @ (128,128) block-diag ones -> per-segment sums, lane-broadcast.
    s = jnp.dot(e, bd_ref[...], preferred_element_type=jnp.float32)
    # TODO(synk): if segments packed in the same 128-lane row differ by >~87
    # in max, e underflows and s can hit 0 for the weaker segment (NaN there);
    # an exact per-segment max (log2(C) pltpu.roll butterfly) would remove it.
    o_ref[...] = (e / s).astype(o_ref.dtype)


# ----------------------------------------------------------------------------
# Tiling helpers
# ----------------------------------------------------------------------------
def _sublane_pack(itemsize: int) -> int:
    """Rows per packed sublane group: 8 (32-bit), 16 (16-bit), 32 (8-bit)."""
    return 8 * max(1, 4 // itemsize)


def _choose_row_tile(n_rows: int, n_cols: int, itemsize: int) -> int:
    """Largest row tile hitting ~4 MiB blocks within the VMEM budget."""
    pack = _sublane_pack(itemsize)
    # Per-row VMEM cost: double-buffered in + out blocks plus ~3 f32
    # temporaries (x upcast, exp, seg-sum) inside the kernel.
    per_row_vmem = max(1, n_cols * (4 * itemsize + 3 * 4))
    tr_budget = max(1, _VMEM_BUDGET_BYTES // per_row_vmem)
    tr_target = max(1, _TARGET_BLOCK_BYTES // max(1, n_cols * itemsize))
    tr = min(tr_target, tr_budget, n_rows)
    if tr < n_rows:
        # Block's sublane dim must be a multiple of the pack unless it spans
        # the full array; ragged last block is masked by Pallas.
        tr = max(pack, (tr // pack) * pack)
    if tr >= n_rows:
        tr = n_rows
        # v7x megacore: give the "parallel" row axis >= 2 steps so both
        # TensorCores get work (harmless no-op on single-TC v5e/v6e).
        if n_rows >= 2 * pack:
            half = pl.cdiv(n_rows, 2)
            tr = ((half + pack - 1) // pack) * pack
    return int(tr)


def _vmem_limit(tr: int, n_cols: int, itemsize: int, extra: int = 0) -> int:
    blocks = 2 * 2 * tr * n_cols * itemsize     # double-buffered in + out
    temps = 3 * tr * n_cols * 4                 # f32 temporaries in the kernel
    need = blocks + temps + extra + (2 << 20)   # + Mosaic internal scratch
    return int(min(56 << 20, max(8 << 20, need)))


# ----------------------------------------------------------------------------
# Wrappers
# ----------------------------------------------------------------------------
def _dense_softmax(x2d: jax.Array, R: int, C: int) -> jax.Array:
    itemsize = jnp.dtype(x2d.dtype).itemsize
    TR = _choose_row_tile(R, C, itemsize)
    grid = (pl.cdiv(R, TR),)
    # TODO(synk): for rows too wide for one (pack, C) slab in VMEM, add a
    # trailing "arbitrary" grid axis over C with an online (m, l, acc) carry.
    return pl.pallas_call(
        _softmax_kernel,
        out_shape=jax.ShapeDtypeStruct((R, C), x2d.dtype),
        grid_spec=pltpu.PrefetchScalarGridSpec(
            num_scalar_prefetch=0,
            grid=grid,
            in_specs=[pl.BlockSpec((TR, C), lambda i: (i, 0))],
            out_specs=pl.BlockSpec((TR, C), lambda i: (i, 0)),
        ),
        compiler_params=pltpu.CompilerParams(
            dimension_semantics=("parallel",),
            vmem_limit_bytes=_vmem_limit(TR, C, itemsize),
        ),
    )(x2d)


def _packed_softmax(x2d: jax.Array, R: int, C: int) -> jax.Array:
    """Lane-packed path for C < 128 with 128 % C == 0."""
    G = _LANES // C
    Rpad = pl.cdiv(R, G) * G
    if Rpad != R:
        # Pad with zeros so R*C is a multiple of 128; padded segments are
        # normalized independently and sliced off below.
        x2d = jnp.pad(x2d, ((0, Rpad - R), (0, 0)))
    Rp = (Rpad * C) // _LANES
    xp = x2d.reshape(Rp, _LANES)                      # free contiguous reshape

    seg = jnp.arange(_LANES, dtype=jnp.int32) // C
    bd = (seg[:, None] == seg[None, :]).astype(jnp.float32)   # block-diag ones

    itemsize = jnp.dtype(x2d.dtype).itemsize
    TR = _choose_row_tile(Rp, _LANES, itemsize)
    grid = (pl.cdiv(Rp, TR),)
    extra = 2 * _LANES * _LANES * 4                   # double-buffered bd

    out_p = pl.pallas_call(
        _softmax_packed_kernel,
        out_shape=jax.ShapeDtypeStruct((Rp, _LANES), x2d.dtype),
        grid_spec=pltpu.PrefetchScalarGridSpec(
            num_scalar_prefetch=0,
            grid=grid,
            in_specs=[
                pl.BlockSpec((_LANES, _LANES), lambda i: (0, 0)),   # resident
                pl.BlockSpec((TR, _LANES), lambda i: (i, 0)),
            ],
            out_specs=pl.BlockSpec((TR, _LANES), lambda i: (i, 0)),
        ),
        compiler_params=pltpu.CompilerParams(
            dimension_semantics=("parallel",),
            vmem_limit_bytes=_vmem_limit(TR, _LANES, itemsize, extra),
        ),
    )(bd, xp)

    out2d = out_p.reshape(Rpad, C)
    if Rpad != R:
        out2d = out2d[:R]
    return out2d


def pallas_softmax(x: jax.Array, axis: int = -1) -> jax.Array:
    """softmax(x, axis) with the reduction computed inside a Pallas TPU kernel."""
    if axis not in (-1, x.ndim - 1):
        # TODO(synk): general-axis support needs a transpose; only the dim=-1
        # case used by this Apply instantiation is implemented.
        raise NotImplementedError("pallas_softmax only supports the last axis")

    orig_shape = x.shape
    C = orig_shape[-1]
    x2d = x.reshape(-1, C)
    R = x2d.shape[0]

    if C < _LANES and _LANES % C == 0:
        out2d = _packed_softmax(x2d, R, C)
    else:
        # TODO(synk): C < 128 with 128 % C != 0 still uses the masked-store
        # dense path; a lane-padded segmented layout would recover bandwidth.
        out2d = _dense_softmax(x2d, R, C)

    return out2d.reshape(orig_shape)


# ----------------------------------------------------------------------------
# Faithful JAX port of the PyTorch `Apply` module's forward logic.
# ----------------------------------------------------------------------------
class Apply:
    def __init__(self, f: Callable, *args, **kwargs):
        self.f = f
        self.kwargs = kwargs
        self.args = args

    def __call__(self, input: Any) -> Any:
        kwargs = {}
        args = []
        if self.args is not None:
            if isinstance(self.args, list):
                if not hasattr(input, "__getitem__") and len(self.args) > 1:
                    raise Exception(
                        "The input needs %d components for %s"
                        % (len(self.args), ", ".join(self.args))
                    )
                if len(input) != len(self.args) and len(self.args) > 1:
                    raise Exception(
                        "The input needs %d components for %s"
                        % (len(self.args), ", ".join(self.args))
                    )
                # NOTE: reproduces the original's (index, name) unpacking.
                for i, arg in self.args:
                    kwargs[arg] = input[i]
        if len(self.args) == 0:
            args = [input]
        kwargs.update(self.kwargs)
        return self.f(*args, **kwargs)

    def __repr__(self) -> str:
        s = "Apply(%s" % self.f.__name__
        if len(self.args) > 0:
            s += ", " + ", ".join(self.args)
        if len(self.kwargs) > 0:
            s += ", " + ", ".join(
                "%s=%s" % (k, str(v)) for k, v in self.kwargs.items()
            )
        s += ")"
        return s


if __name__ == "__main__":
    key = jax.random.PRNGKey(0)
    # NCHW input, same convention as PyTorch: batch=2, channels=4, spatial=16x16.
    x = jax.random.normal(key, (2, 4, 16, 16), dtype=jnp.float32)

    # Concrete instantiation: Apply(F.softmax, dim=-1) -> Apply(pallas_softmax, axis=-1)
    module = Apply(pallas_softmax, axis=-1)

    out = jax.block_until_ready(module(x))
    ref = jax.nn.softmax(x, axis=-1)
    assert out.shape == x.shape and out.dtype == x.dtype
    assert jnp.max(jnp.abs(out - ref)) < 1e-5

    # Exercise the padded lane-packed path (R not a multiple of 128/C).
    x2 = jax.random.normal(jax.random.PRNGKey(1), (3, 5, 7, 16), dtype=jnp.float32)
    out2 = jax.block_until_ready(module(x2))
    assert jnp.max(jnp.abs(out2 - jax.nn.softmax(x2, axis=-1))) < 1e-5

    # Exercise the dense (C >= 128) path.
    x3 = jax.random.normal(jax.random.PRNGKey(2), (4, 256), dtype=jnp.float32)
    out3 = jax.block_until_ready(module(x3))
    assert jnp.max(jnp.abs(out3 - jax.nn.softmax(x3, axis=-1))) < 1e-5

    print("KERNEL_OK")
</pallas_src>

<mosaic_0001>
module attributes {stable_mosaic.version = 11 : i64} {
  func.func @_softmax_packed_kernel(%arg0: i32, %arg1: memref<128x128xf32, #tpu.memory_space<vmem>>, %arg2: memref<8x128xf32, #tpu.memory_space<vmem>>, %arg3: memref<8x128xf32, #tpu.memory_space<vmem>>) attributes {dimension_semantics = [#tpu.dimension_semantics<parallel>], iteration_bounds = array<i64: 2>, scalar_prefetch = 0 : i64, scratch_operands = 0 : i64, tpu.core_type = #tpu.core_type<tc>, window_params = [{pipeline_mode = #tpu.pipeline_mode<synchronous>, transform_indices = @transform_0, window_bounds = array<i64: 128, 128>}, {transform_indices = @transform_1, window_bounds = array<i64: 8, 128>}, {transform_indices = @transform_2, window_bounds = array<i64: 8, 128>}]} {
    %c0 = arith.constant 0 : index
    %c0_0 = arith.constant 0 : index
    %0 = vector.load %arg2[%c0, %c0_0] : memref<8x128xf32, #tpu.memory_space<vmem>>, vector<8x128xf32>
    %cst = arith.constant dense<0xFF800000> : vector<8xf32>
    %1 = vector.multi_reduction <maximumf>, %0, %cst [1] : vector<8x128xf32> to vector<8xf32>
    %2 = vector.shape_cast %1 : vector<8xf32> to vector<8x1xf32>
    %3 = vector.broadcast %2 : vector<8x1xf32> to vector<8x128xf32>
    %4 = arith.subf %0, %3 : vector<8x128xf32>
    %5 = math.exp %4 : vector<8x128xf32>
    %c0_1 = arith.constant 0 : index
    %c0_2 = arith.constant 0 : index
    %6 = vector.load %arg1[%c0_1, %c0_2] : memref<128x128xf32, #tpu.memory_space<vmem>>, vector<128x128xf32>
    %cst_3 = arith.constant dense<0.000000e+00> : vector<8x128xf32>
    %7 = tpu.matmul %5, %6, %cst_3 {dimension_numbers = #tpu.dot_dimension_numbers<[1], [0], [0], [1], [0, 0, 1, 1], [], []>} : vector<8x128xf32>, vector<128x128xf32>, vector<8x128xf32> -> vector<8x128xf32>
    %8 = arith.divf %5, %7 : vector<8x128xf32>
    %c0_4 = arith.constant 0 : index
    %c0_5 = arith.constant 0 : index
    %9 = vector.load %arg3[%c0_4, %c0_5] : memref<8x128xf32, #tpu.memory_space<vmem>>, vector<8x128xf32>
    tpu.vector_store %arg3[%c0_4, %c0_5], %8 {strides = array<i32>} : memref<8x128xf32, #tpu.memory_space<vmem>>, vector<8x128xf32>,
    return
  }
  func.func @transform_0(%arg0: i32) -> (i32, i32) {
    %c0_i32 = arith.constant 0 : i32
    %c0_i32_0 = arith.constant 0 : i32
    %c0_i32_1 = arith.constant 0 : i32
    return %c0_i32, %c0_i32_0 : i32, i32
  }
  func.func @transform_1(%arg0: i32) -> (i32, i32) {
    %c0_i32 = arith.constant 0 : i32
    %c0_i32_0 = arith.constant 0 : i32
    return %arg0, %c0_i32 : i32, i32
  }
  func.func @transform_2(%arg0: i32) -> (i32, i32) {
    %c0_i32 = arith.constant 0 : i32
    %c0_i32_0 = arith.constant 0 : i32
    return %arg0, %c0_i32 : i32, i32
  }
}

</mosaic_0001>

<bundles_post_ra>
// kernel: tpu_custom_call.1
= control target key start
LH: loop header
LB: loop body
LE: loop exit
PB: predicated region body
PF: predicated region fallthrough
CT: control target
= control target key end

     0   :  { %7 = vsyncpa [#allocation3], 0  ;;  %s874_s0 = inlined_call_operand.hbm [shape: f32[128,128], index: 0, kind: input, shape index: {}]   ;;  %s875_s1 = inlined_call_operand.hbm [shape: f32[16,128], index: 1, kind: input, shape index: {}]   ;;  %s876_s2 = inlined_call_operand.hbm [shape: f32[16,128], index: 2, kind: output, shape index: {}]  }
   0x1   :  { %8 = vsyncpa [#allocation6], 0 }
   0x2   :  { %10 = vsyncpa [#allocation6 + $0x1], 0 }
   0x3   :  { %11 = vsyncpa [#allocation4], 0 }
   0x4   :  { %13 = vsyncpa [#allocation4 + $0x1], 0  ;;  %s674_s9 = smov 0   ;;  %s676_s10 = smov 0  }
   0x5   :  { %s678_s11 = smov 0   ;;  %s680_s12 = smov 0  }
   0x6 LB: > { %s695_s13 = sadd.s32 4294967295, %s649_s12   ;;  %s365_s14 = sadd.s32 4294967294, %s649_s12   ;;  %s649_s12 = sphi %s680_s12, %s896_s12   ;;  %s645_s11 = sphi %s678_s11, %s895_s11   ;;  %s641_s10 = sphi %s676_s10, %s894_s10   ;;  %s637_s9 = sphi %s674_s9, %s893_s9  }
   0x7   : > { %p60_p0 = scmp.ne.s32.totalorder %s641_s10, %s637_s9  ;;  %p877_p1 = scmp.eq.s32.totalorder %s695_s13, 0 }
   0x8   : > { %p90_p3 = scmp.eq.s32.totalorder %s365_s14, 1  ;;  %p366_p5 = scmp.ge.s32.totalorder %s649_s12, 1 }
   0x9   : > { %p704_p4 = por %p877_p1, %p60_p0  ;;  %p97_p7 = scmp.lt.s32.totalorder %s649_s12, 3 }
   0xa   : > { %p709_p6 = por %p90_p3, %p60_p0  ;;  %s651_s18 = smov [#allocation2]  }
   0xb   : > { %s880_s15 = scalar_select %p704_p4, 1, 0 }
   0xc   : > { %s881_s16 = scalar_select %p709_p6, 1, 0 }
   0xd   : > { %p714_p8 = pnand %p366_p5, %p97_p7  ;;  %s109_s19 = sshll.u32 %s651_s18, 4  ;;  %s718_s19 = int_to_ptr.vmem [resolvable:$true] %s109_s19 }
   0xe   : > { %s730_s21 = sadd.s32 1, %s649_s12   ;;  %s47_s22 = sadd.s32 1, %s645_s11 }
   0xf   : > { %s882_s17 = scalar_select %p714_p8, 1, 0 }
  0x10   : > { %p463_p9 = pneg %p714_p8  ;;  %s44_s23 = ssub.s32 %s649_s12, %s730_s21 }
  0x11   : > { %s521_s26 = scalar_lea.hbm %s874_s0, 2048 }
  0x12   : > { %p725_p11 = pnand %p463_p9, %p877_p1  ;;  %p522_p12 = scmp.ne.s32.totalorder %s874_s0, %s521_s26 }
  0x13   : > { %p528_p5 = scmp.lt.u32.totalorder %s521_s26, %s874_s0 }
  0x14   : > { %p523_p13 = pneg %p725_p11 }
  0x16   : > { %p524_p0 = pnand %p523_p13, %p522_p12 }
  0x18   : > { %p525_p3 = pneg %p524_p0 }
  0x1a   : > { %p530_p7 = pnand %p528_p5, %p525_p3 }
  0x1c   : > { %533 = shalt.err (!%p530_p7)
}
  0x1d   : > { %s534_s3 = scalar_lea.vmem %s718_s19, 2048  ;;  %p542_p2 = scmp.lt.s32.totalorder %s718_s19, %s718_s19 }
  0x1e   : > { %p535_p9 = scmp.ne.s32.totalorder %s718_s19, %s534_s3  ;;  %p543_p6 = scmp.lt.s32.totalorder %s534_s3, %s534_s3 }
  0x20   : > { %p537_p10 = pnand %p535_p9, %p523_p13  ;;  %p544_p4 = por %p543_p6, %p542_p2 }
  0x22   : > { %p538_p1 = pneg %p537_p10 }
  0x24   : > { %p545_p8 = pnand %p544_p4, %p538_p1 }
  0x26   : > { %548 = shalt.err (!%p545_p8)
}
  0x27   : > { %s652_s4 = smov 128   ;;  %s653_s5 = smov 8  }
  0x28   : > { %466 = dma.hbm_to_vmem [thread:$0]  (!%p725_p11), %s874_s0, 2048, %s718_s19, [#allocation3], %s652_s4, %s652_s4, %s653_s5  }
  0x29   : > { %p45_p2 = scmp.eq.s32.totalorder %s44_s23, 0  ;;  %p54_p1 = scmp.ne.s32.totalorder %s645_s11, %s641_s10 }
  0x2a   : > { %p55_p4 = scmp.eq.s32.totalorder %s649_s12, 0  ;;  %p476_p6 = scmp.lt.s32.totalorder %s649_s12, 2 }
  0x2b   : > { %s761_s8 = scalar_select %p45_p2, %s645_s11, %s47_s22  }
  0x2c   : > { %p56_p8 = por %p55_p4, %p54_p1  ;;  %p884_p10 = scmp.eq.s32.totalorder %s695_s13, 1 }
  0x2d   : > { %s123_s18 = sand.u32 1, %s645_s11   ;;  %s370_s24 = sshll.u32 %s649_s12, 7 }
  0x2e   : > { %p765_p12 = por %p884_p10, %p54_p1  ;;  %s369_s25 = sshll.u32 %s123_s18, 3 }
  0x2f   : > { %s774_s27 = scalar_lea.hbm %s875_s1, %s370_s24  ;;  %s127_s19 = scalar_lea.vmem [#allocation5], %s369_s25 }
  0x30   : > { %s134_s22 = sshll.u32 %s127_s19, 4  ;;  %p776_p11 = pnand %p476_p6, %p56_p8  ;;  %s780_s22 = int_to_ptr.vmem [resolvable:$true] %s134_s22 }
  0x31   : > { %s124_s28 = scalar_lea.sflag [#allocation6], %s123_s18  ;;  %s549_s29 = scalar_lea.hbm %s774_s27, 128 }
  0x32   : > { %p550_p13 = scmp.ne.s32.totalorder %s774_s27, %s549_s29  ;;  %p551_p0 = pneg %p776_p11 }
  0x33   : > { %s554_s4 = scalar_lea.hbm %s875_s1, 256  ;;  %p555_p7 = scmp.lt.u32.totalorder %s774_s27, %s875_s1 }
  0x34   : > { %p552_p3 = pnand %p551_p0, %p550_p13  ;;  %p556_p9 = scmp.lt.u32.totalorder %s554_s4, %s549_s29 }
  0x35   : > { %p558_p1 = scmp.lt.u32.totalorder %s549_s29, %s774_s27 }
  0x36   : > { %p553_p5 = pneg %p552_p3  ;;  %p557_p2 = por %p556_p9, %p555_p7 }
  0x38   : > { %p559_p4 = por %p558_p1, %p557_p2 }
  0x3a   : > { %p560_p6 = pnand %p559_p4, %p553_p5 }
  0x3c   : > { %563 = shalt.err (!%p560_p6)
}
  0x3d   : > { %s564_s7 = scalar_lea.vmem %s780_s22, 128  ;;  %s654_s18 = smov [#allocation5]  }
  0x3e   : > { %p565_p8 = scmp.ne.s32.totalorder %s780_s22, %s564_s7  ;;  %s569_s24 = sshll.u32 %s654_s18, 4  ;;  %s570_s24 = int_to_ptr.vmem [resolvable:$false] %s569_s24 }
  0x3f   : > { %s571_s25 = scalar_lea.vmem %s570_s24, 256  ;;  %p572_p3 = scmp.lt.s32.totalorder %s780_s22, %s570_s24 }
  0x40   : > { %p567_p10 = pnand %p565_p8, %p551_p0  ;;  %p573_p7 = scmp.lt.s32.totalorder %s571_s25, %s564_s7 }
  0x42   : > { %p568_p13 = pneg %p567_p10  ;;  %p574_p9 = por %p573_p7, %p572_p3 }
  0x44   : > { %p575_p2 = pnand %p574_p9, %p568_p13 }
  0x46   : > { %578 = shalt.err (!%p575_p2)
}
  0x47   : > { %470 = dma.hbm_to_vmem [thread:$0]  (!%p776_p11), %s774_s27, 128, %s780_s22, %s124_s28  }
  0x48   : > { %p887_p5 = scmp.ne.s32.totalorder %s882_s17, 0 }
  0x49   : > { %p888_p0 = scmp.eq.s32.totalorder (!%p887_p5), %s695_s13, 0 }
  0x4a   : > { %143 = sbr.rel (%p887_p5) target bundleno = 483 (0x1e3), region = 28 }
  0x51   : > { %624 = dma.done.wait (%p888_p0), [#allocation3], 2048   ;;  %p889_p1 = pmov %p888_p0 }
  0x52   : > { %s814_s20 = sand.u32 1, %s641_s10   ;;  %p890_p11 = scmp.ne.s32.totalorder %s880_s15, 0 }
  0x53   : > { %626 = vsyncadd (%p889_p1), [#allocation3], 4294965248  ;;  %s373_s26 = sshll.u32 %s814_s20, 3  ;;  %s150_s19 = scalar_lea.sflag [#allocation6], %s814_s20 }
  0x54   : > { %s153_s27 = scalar_lea.vmem [#allocation5], %s373_s26 }
  0x55   : > { %628 = dma.done.wait (%p890_p11), %s150_s19, 128  }
  0x56   : > { %630 = vsyncadd (%p890_p11), %s150_s19, 4294967168  ;;  %v655_v0 = vmov 0.0|0.0   ;;  %v174_v1 = vld [vmem:[%s153_s27] sm:$0xff]  ;;  %v182_v5 = vld [vmem:[#allocation2 + $0x10] sm:$0xff]  ;;  %vm656_vm0 = vmmov 0   ;;  %v657_v22 = vmov 0.0  }
  0x57   : > { %431 = vmatprep.subr.bf16.mxu0 %v655_v0  ;;  %v180_v2 = vld [vmem:[#allocation2] sm:$0xff]  ;;  %v181_v3 = vld [vmem:[#allocation2 + $0x8] sm:$0xff]  ;;  %175 = vmax.xlane.f32.xlu0 %v174_v1  ;;  %v183_v6 = vld [vmem:[#allocation2 + $0x18] sm:$0xff]  ;;  %s376_s15 = sshll.u32 %s695_s13, 7  ;;  %s173_s17 = scalar_lea.vmem [#allocation7], %s373_s26 }
  0x58   : > { %v432_v4 = vpack.c.bf16 %v181_v3, %v180_v2  ;;  %v435_v7 = vpack.c.bf16 %v183_v6, %v182_v5  ;;  %v184_v8 = vld [vmem:[#allocation2 + $0x20] sm:$0xff]  ;;  %v185_v9 = vld [vmem:[#allocation2 + $0x28] sm:$0xff]  ;;  %v186_v11 = vld [vmem:[#allocation2 + $0x30] sm:$0xff]  ;;  %428 = vmatprep.mubr.msk.f32.mxu0 %vm656_vm0, %v657_v22  ;;  %s283_s22 = sshll.u32 %s173_s17, 4  ;;  %s830_s29 = scalar_lea.hbm %s876_s2, %s376_s15  ;;  %s832_s22 = int_to_ptr.vmem [resolvable:$true] %s283_s22 }
  0x59   : > { %v438_v10 = vpack.c.bf16 %v185_v9, %v184_v8  ;;  %v187_v12 = vld [vmem:[#allocation2 + $0x38] sm:$0xff]  ;;  %v188_v14 = vld [vmem:[#allocation2 + $0x40] sm:$0xff]  ;;  %v189_v15 = vld [vmem:[#allocation2 + $0x48] sm:$0xff]  ;;  %s270_s30 = scalar_lea.sflag [#allocation4], %s814_s20  ;;  %s579_s3 = scalar_lea.vmem %s832_s22, 128 }
  0x5a   : > { %433 = vmatpush3.bf16.msra.mxu0 %v432_v4  ;;  %v441_v13 = vpack.c.bf16 %v187_v12, %v186_v11  ;;  %v444_v16 = vpack.c.bf16 %v189_v15, %v188_v14  ;;  %v190_v17 = vld [vmem:[#allocation2 + $0x50] sm:$0xff]  ;;  %v191_v18 = vld [vmem:[#allocation2 + $0x58] sm:$0xff]  ;;  %v192_v20 = vld [vmem:[#allocation2 + $0x60] sm:$0xff]  ;;  %p580_p4 = scmp.ne.s32.totalorder %s832_s22, %s579_s3  ;;  %s658_s13 = smov [#allocation7]  }
  0x5b   : > { %434 = vmatprep.subr.bf16.mxu0 %v655_v0  ;;  %v447_v19 = vpack.c.bf16 %v191_v18, %v190_v17  ;;  %v193_v21 = vld [vmem:[#allocation2 + $0x68] sm:$0xff]  ;;  %v194_v24 = vld [vmem:[#allocation2 + $0x70] sm:$0xff]  ;;  %v195_v25 = vld [vmem:[#allocation2 + $0x78] sm:$0xff]  ;;  %s583_s4 = sshll.u32 %s658_s13, 4  ;;  %s584_s4 = int_to_ptr.vmem [resolvable:$false] %s583_s4 }
  0x5c   : > { %v450_v23 = vpack.c.bf16 %v193_v21, %v192_v20  ;;  %v453_v26 = vpack.c.bf16 %v195_v25, %v194_v24  ;;  %p581_p6 = pnand %p580_p4, %p765_p12  ;;  %s585_s5 = scalar_lea.vmem %s584_s4, 256 }
  0x5d   : > { %p586_p10 = scmp.lt.s32.totalorder %s832_s22, %s584_s4  ;;  %p587_p13 = scmp.lt.s32.totalorder %s585_s5, %s579_s3 }
  0x5e   : > { %436 = vmatpush3.bf16.msra.mxu0 %v435_v7  ;;  %p582_p8 = pneg %p581_p6 }
  0x5f   : > { %437 = vmatprep.subr.bf16.mxu0 %v655_v0  ;;  %p588_p3 = por %p587_p13, %p586_p10 }
  0x61   : > { %p589_p7 = pnand %p588_p3, %p582_p8 }
  0x62   : > { %439 = vmatpush3.bf16.msra.mxu0 %v438_v10 }
  0x63   : > { %440 = vmatprep.subr.bf16.mxu0 %v655_v0 }
  0x66   : > { %442 = vmatpush3.bf16.msra.mxu0 %v441_v13 }
  0x67   : > { %443 = vmatprep.subr.bf16.mxu0 %v655_v0 }
  0x6a   : > { %445 = vmatpush3.bf16.msra.mxu0 %v444_v16 }
  0x6b   : > { %446 = vmatprep.subr.bf16.mxu0 %v655_v0 }
  0x6e   : > { %448 = vmatpush3.bf16.msra.mxu0 %v447_v19 }
  0x6f   : > { %449 = vmatprep.subr.bf16.mxu0 %v655_v0 }
  0x72   : > { %451 = vmatpush3.bf16.msra.mxu0 %v450_v23 }
  0x73   : > { %452 = vmatprep.subr.bf16.mxu0 %v655_v0 }
  0x76   : > { %454 = vmatpush3.bf16.msra.mxu0 %v453_v26 }
  0xe4   : > { %v176_v27 = vpop.xlane.xlu0 %175 }
  0xe5   : > { %v177_v28 = vsub.f32 %v174_v1, %v176_v27 }
  0xe7   : > { %v178_v29 = vmul.f32 1.442695, %v177_v28 }
  0xe9   : > { %517 = vpow2.f32 %v178_v29 }
  0xf3   : > { %v518_v30 = vpop.eup %517 }
  0xf4   : > { %429 = vmatmul.mubr.f32.vlgmr.msra.gmra.mrb[0].mxu0 %v518_v30 }
 0x1c7   : > { %v262_v31 = vpop.f32.mrb[0].mxu0 }
 0x1c8   : > { %519 = vrcp.f32 %v262_v31  ;;  %v430_v32 = vpop.f32.mrb[1].mxu0 }
 0x1d2   : > { %v520_v33 = vpop.eup %519 }
 0x1d3   : > { %v267_v34 = vmul.f32 %v520_v33, %v518_v30 }
 0x1d5   : > { %268 = vst [vmem:[%s173_s17] sm:$0xff] %v267_v34 }
 0x1d6   : > { %592 = shalt.err (!%p589_p7)
}
 0x1d7   : > { %s593_s6 = scalar_lea.hbm %s830_s29, 128  ;;  %s597_s24 = scalar_lea.hbm %s876_s2, 256 }
 0x1d8   : > { %p594_p9 = scmp.ne.s32.totalorder %s830_s29, %s593_s6  ;;  %p598_p0 = scmp.lt.u32.totalorder %s830_s29, %s876_s2 }
 0x1d9   : > { %p599_p1 = scmp.lt.u32.totalorder %s597_s24, %s593_s6  ;;  %p601_p4 = scmp.lt.u32.totalorder %s593_s6, %s830_s29 }
 0x1da   : > { %p595_p2 = pnand %p594_p9, %p765_p12 }
 0x1db   : > { %p600_p11 = por %p599_p1, %p598_p0 }
 0x1dc   : > { %p596_p5 = pneg %p595_p2 }
 0x1dd   : > { %p602_p6 = por %p601_p4, %p600_p11 }
 0x1df   : > { %p603_p8 = pnand %p602_p6, %p596_p5 }
 0x1e1   : > { %606 = shalt.err (!%p603_p8)
}
 0x1e2   : > { %461 = dma.vmem_to_hbm [thread:$0]  (%p765_p12), %s832_s22, 128, %s830_s29, %s270_s30  }
 0x1e3 PF: > { %s295_s26 = sand.u32 1, %s637_s9   ;;  %p891_p10 = scmp.ne.s32.totalorder %s881_s16, 0 }
 0x1e4   : > { %p892_p13 = scmp.ge.s32.totalorder %s649_s12, 2  ;;  %s296_s19 = scalar_lea.sflag [#allocation4], %s295_s26 }
 0x1e6   : > { %p472_p3 = pnand %p892_p13, %p891_p10 }
 0x1e8   : > { %632 = dma.done.wait (!%p472_p3), %s296_s19, 128  }
 0x1e9   : > { %634 = vsyncadd (!%p472_p3), %s296_s19, 4294967168  ;;  %p16_p7 = scmp.ge.s32.totalorder %s730_s21, 4   ;;  %s893_s9 = smov %s641_s10 }
 0x1ea   : > { %s894_s10 = smov %s645_s11  ;;  %s895_s11 = smov %s761_s8 }
 0x1eb   : > { %s896_s12 = smov %s730_s21  ;;  %18 = sbr.rel (!%p16_p7) target bundleno = 6 (0x6), region = 78 }
 0x1f2   :  { %301 = vsyncpa [#allocation3], 1 }
 0x1f3   :  { %303 = vsyncpa [#allocation3 + $0x1], 1 }
 0x1f4   :  { %304 = vsyncpa [#allocation6], 1 }
 0x1f5   :  { %306 = vsyncpa [#allocation6 + $0x1], 1 }
 0x1f6   :  { %307 = vsyncpa [#allocation4], 1 }
 0x1f7   :  { %309 = vsyncpa [#allocation4 + $0x1], 1 }

</bundles_post_ra>
